<compile_context>
chip_gen: v6e
topology: v6e:2x2x1
jax: 0.10.0
libtpu: 0.0.40
codegen_flags: <defaults>
</compile_context>

<pallas_src>
import functools

import jax
import jax.numpy as jnp
from jax.experimental import pallas as pl
from jax.experimental.pallas import tpu as pltpu

IGNORE_INDEX = -1
CE_COEF = 0.5
JACCARD_COEF = 0.25
FOCAL_COEF = 0.25
SMOOTH = 1e-7


def _tree_sum(parts):
    while len(parts) > 1:
        nxt = [parts[i] + parts[i + 1] for i in range(0, len(parts) - 1, 2)]
        if len(parts) % 2:
            nxt.append(parts[-1])
        parts = nxt
    return parts[0]


def _fold_tile(a, tr, l, sr, lane_w):
    """(tr, l) -> (sr, lane_w) via static tile-aligned slice adds (pure VPU)."""
    if tr > sr:
        a = _tree_sum([a[j * sr:(j + 1) * sr, :] for j in range(tr // sr)])
    if l > lane_w:
        a = _tree_sum([a[:, j * lane_w:(j + 1) * lane_w]
                       for j in range(l // lane_w)])
    return a


def _hybrid_loss_kernel(x_ref, t_ref, acc_ref, *, c, r_total, tr, l, sr,
                        lane_w, n_inner, needs_row_mask):
    """One (batch b, row-chunk ch, row-tile i) grid step.

    x_ref:   (1, C, TR, L)        logits block (native dtype); each class slab
                                  is a dense (TR, L) sublane x lane tile.
    t_ref:   (1, TR, L)           int32 targets (-1 == ignore).
    acc_ref: (1, 3C+2, SR, LW)    f32 resident accumulator block:
                                  [inter_0..C-1, psum_0..C-1, tsum_0..C-1,
                                   ce_sum, focal_sum].
    """
    i = pl.program_id(2)

    @pl.when(i == 0)
    def _init():
        acc_ref[...] = jnp.zeros_like(acc_ref)

    t = t_ref[0]                                                   # (TR, L)
    if needs_row_mask:
        # ragged last row-tile: scrub rows past the end of the image
        ch = pl.program_id(1)
        row0 = (ch * n_inner + i) * tr
        rows = row0 + jax.lax.broadcasted_iota(jnp.int32, (tr, l), 0)
        inb = rows < r_total
        t = jnp.where(inb, t, IGNORE_INDEX)
    valid = (t != IGNORE_INDEX).astype(jnp.float32)                # (TR, L)

    def slab(k):
        xk = x_ref[0, k].astype(jnp.float32)                       # (TR, L)
        if needs_row_mask:
            xk = jnp.where(inb, xk, 0.0)                           # no inf/NaN
        return xk

    # class-axis max and softmax denominator: full-vreg VPU ops across C slabs
    # (class loop is statically unrolled; C is small for segmentation)
    m = slab(0)
    for k in range(1, c):
        m = jnp.maximum(m, slab(k))
    exs = []
    se = None
    for k in range(c):
        e = jnp.exp(slab(k) - m)
        exs.append(e)
        se = e if se is None else se + e
    log_se = jnp.log(se)
    inv_se = pl.reciprocal(se, approx=True)

    # per-class Jaccard accumulators + per-pixel p_t / x_t
    # (logp is never materialized: logp_t = x_t - (m + log_se) on valid pixels)
    p_t = jnp.zeros_like(m)
    x_t = jnp.zeros_like(m)
    for k in range(c):
        oh = (t == k).astype(jnp.float32)                          # one-hot
        pk = exs[k] * inv_se                                       # probs_k
        io = pk * oh                                               # probs*onehot
        p_t = p_t + io
        x_t = x_t + slab(k) * oh
        acc_ref[0, k] += _fold_tile(io, tr, l, sr, lane_w)             # inter
        acc_ref[0, c + k] += _fold_tile(pk * valid, tr, l, sr, lane_w)  # psum
        acc_ref[0, 2 * c + k] += _fold_tile(oh, tr, l, sr, lane_w)      # tsum

    # CE / focal per-pixel terms (ignored & OOB pixels contribute exactly 0)
    ce_i = (m + log_se) * valid - x_t                              # = -logp_t
    q = 1.0 - p_t
    focal_i = q * q * ce_i                                         # gamma = 2
    acc_ref[0, 3 * c] += _fold_tile(ce_i, tr, l, sr, lane_w)
    acc_ref[0, 3 * c + 1] += _fold_tile(focal_i, tr, l, sr, lane_w)


def _pick_lane_dim(p, hi=2048):
    """Largest divisor of p that is a multiple of 128 and <= hi; else the
    largest divisor in [128, hi]; else p itself (single-row fallback)."""
    for cand in range(hi - hi % 128, 127, -128):
        if p % cand == 0:
            return cand
    for cand in range(hi, 127, -1):
        if p % cand == 0:
            return cand
    return p


def hybrid_loss(logits_nchw, targets_nhw, *, max_lane=2048):
    """HybridLoss forward. logits: (N, C, H, W) float, targets: (N, H, W) int."""
    n, c, h, w = logits_nchw.shape
    p = h * w

    # pixel layout: p -> (rows R, lanes L); pure-view reshapes, no HBM copies
    l = _pick_lane_dim(p, hi=max_lane)
    r = p // l
    x = logits_nchw.reshape(n, c, r, l)
    t = targets_nhw.reshape(n, r, l).astype(jnp.int32)

    # generation-aware VMEM budget (v5e/v6e: 128 MiB physical, v7x: 64 MiB)
    try:
        vmem_cap = int(pltpu.get_tpu_info().vmem_capacity_bytes)
    except Exception:
        vmem_cap = 64 * 1024 * 1024
    vmem_limit = int(max(32 * 1024 * 1024,
                         min(3 * vmem_cap // 4, 100 * 1024 * 1024)))

    # bytes/pixel: double-buffered native inputs + in-kernel f32 temporaries
    per_px = 2 * (c * x.dtype.itemsize + t.dtype.itemsize) + 4 * (2 * c + 12)
    px_budget = (vmem_limit // 2) // per_px

    # row-tile size: as large as the budget allows; prefer an exact divisor of
    # R so the ragged-row mask branch does not get compiled
    if r <= 8:
        tr = r
    else:
        cap = max(8, min(px_budget // l, r))
        if cap >= r:
            tr = r
        else:
            cap8 = max(8, (cap // 8) * 8)
            tr = cap8
            d = cap8
            while d >= max(8, cap8 // 2):
                if r % d == 0:
                    tr = d
                    break
                d -= 8
    n_row_tiles = -(-r // tr)
    needs_row_mask = n_row_tiles * tr != r
    sr = 8 if tr % 8 == 0 else tr
    lane_w = 128 if l % 128 == 0 else l

    # megacore: add a parallel row-chunk axis when batch alone cannot occupy
    # both v7x TensorCores (no effect on single-core v5e/v6e)
    n_chunks = 2 if (n == 1 and n_row_tiles >= 2 and n_row_tiles % 2 == 0) else 1
    n_inner = n_row_tiles // n_chunks

    s_dim = 3 * c + 2
    kernel = functools.partial(
        _hybrid_loss_kernel, c=c, r_total=r, tr=tr, l=l, sr=sr, lane_w=lane_w,
        n_inner=n_inner, needs_row_mask=needs_row_mask)

    acc = pl.pallas_call(
        kernel,
        out_shape=jax.ShapeDtypeStruct((n * n_chunks, s_dim, sr, lane_w),
                                       jnp.float32),
        grid_spec=pltpu.PrefetchScalarGridSpec(
            num_scalar_prefetch=0,
            grid=(n, n_chunks, n_inner),
            in_specs=[
                pl.BlockSpec((1, c, tr, l),
                             lambda b, ch, i: (b, 0, ch * n_inner + i, 0)),
                pl.BlockSpec((1, tr, l),
                             lambda b, ch, i: (b, ch * n_inner + i, 0)),
            ],
            out_specs=pl.BlockSpec((1, s_dim, sr, lane_w),
                                   lambda b, ch, i: (b * n_chunks + ch, 0, 0, 0)),
        ),
        compiler_params=pltpu.CompilerParams(
            dimension_semantics=("parallel", "parallel", "arbitrary"),
            vmem_limit_bytes=vmem_limit),
    )(x, t)

    # tiny final reduction in plain JAX
    sums = jnp.sum(acc, axis=(0, 2, 3))                    # (3C+2,)
    inter = sums[:c]
    psum = sums[c:2 * c]
    tsum = sums[2 * c:3 * c]
    ce_sum = sums[3 * c]
    fo_sum = sums[3 * c + 1]
    # every non-ignored (valid-class) pixel adds exactly 1 to some class count
    n_valid = jnp.sum(tsum)

    union = psum + tsum - inter
    jaccard = (inter + SMOOTH) / (union + SMOOTH)
    jaccard_loss = jnp.mean(-jnp.log(jaccard))
    ce_loss = ce_sum / n_valid
    focal_loss = fo_sum / n_valid
    return (CE_COEF * ce_loss + JACCARD_COEF * jaccard_loss
            + FOCAL_COEF * focal_loss)


def hybrid_loss_ref(logits_nchw, targets_nhw):
    """Pure-JAX reference with identical semantics (for verification)."""
    n, c, h, w = logits_nchw.shape
    x = jnp.transpose(logits_nchw, (0, 2, 3, 1)).reshape(-1, c).astype(jnp.float32)
    t = targets_nhw.reshape(-1)
    valid = (t != IGNORE_INDEX).astype(jnp.float32)
    t_safe = jnp.where(t == IGNORE_INDEX, 0, t)
    logp = jax.nn.log_softmax(x, axis=-1)
    probs = jnp.exp(logp)
    onehot = jax.nn.one_hot(t_safe, c, dtype=jnp.float32) * valid[:, None]
    probs_m = probs * valid[:, None]

    logp_t = jnp.take_along_axis(logp, t_safe[:, None], axis=-1)[:, 0]
    ce = jnp.sum(-logp_t * valid) / jnp.sum(valid)
    p_t = jnp.exp(logp_t)
    focal = jnp.sum((1.0 - p_t) ** 2 * (-logp_t) * valid) / jnp.sum(valid)

    inter = jnp.sum(probs_m * onehot, axis=0)
    union = jnp.sum(probs_m, axis=0) + jnp.sum(onehot, axis=0) - inter
    jac = jnp.mean(-jnp.log((inter + SMOOTH) / (union + SMOOTH)))
    return CE_COEF * ce + JACCARD_COEF * jac + FOCAL_COEF * focal


if __name__ == "__main__":
    key = jax.random.PRNGKey(0)
    k1, k2, k3 = jax.random.split(key, 3)
    N, C, H, W = 2, 4, 16, 16

    logits = jax.random.normal(k1, (N, C, H, W), dtype=jnp.float32)
    targets = jax.random.randint(k2, (N, H, W), 0, C, dtype=jnp.int32)
    # sprinkle some ignored pixels
    ignore_mask = jax.random.uniform(k3, (N, H, W)) < 0.1
    targets = jnp.where(ignore_mask, IGNORE_INDEX, targets)

    loss = jax.block_until_ready(jax.jit(hybrid_loss)(logits, targets))
    ref = jax.block_until_ready(hybrid_loss_ref(logits, targets))
    # 2e-3 tolerance covers the EUP approximate-reciprocal path (~1e-4 rel err)
    assert jnp.allclose(loss, ref, rtol=2e-3, atol=2e-3), (loss, ref)
    print("KERNEL_OK")
</pallas_src>

<mosaic_0001>
module attributes {stable_mosaic.version = 11 : i64} {
  func.func @_hybrid_loss_kernel(%arg0: i32, %arg1: i32, %arg2: i32, %arg3: memref<1x4x1x256xf32, #tpu.memory_space<vmem>>, %arg4: memref<1x1x256xi32, #tpu.memory_space<vmem>>, %arg5: memref<1x14x1x128xf32, #tpu.memory_space<vmem>>) attributes {dimension_semantics = [#tpu.dimension_semantics<parallel>, #tpu.dimension_semantics<parallel>, #tpu.dimension_semantics<arbitrary>], iteration_bounds = array<i64: 2, 1, 1>, scalar_prefetch = 0 : i64, scratch_operands = 0 : i64, tpu.core_type = #tpu.core_type<tc>, window_params = [{transform_indices = @transform_0, window_bounds = array<i64: 1, 4, 1, 256>}, {transform_indices = @transform_1, window_bounds = array<i64: 1, 1, 256>}, {transform_indices = @transform_2, window_bounds = array<i64: 1, 14, 1, 128>}]} {
    %c0_i32 = arith.constant 0 : i32
    %0 = arith.cmpi eq, %arg2, %c0_i32 : i32
    %1 = arith.extui %0 : i1 to i32
    %c0_i32_0 = arith.constant 0 : i32
    %2 = arith.cmpi ne, %1, %c0_i32_0 : i32
    scf.if %2 {
      %cst_153 = arith.constant 0.000000e+00 : f32
      %224 = vector.broadcast %cst_153 : f32 to vector<1x14x1x128xf32>
      %c0_154 = arith.constant 0 : index
      %c0_155 = arith.constant 0 : index
      %c0_156 = arith.constant 0 : index
      %c0_157 = arith.constant 0 : index
      %225 = vector.load %arg5[%c0_154, %c0_155, %c0_156, %c0_157] : memref<1x14x1x128xf32, #tpu.memory_space<vmem>>, vector<1x14x1x128xf32>
      tpu.vector_store %arg5[%c0_154, %c0_155, %c0_156, %c0_157], %224 {strides = array<i32>} : memref<1x14x1x128xf32, #tpu.memory_space<vmem>>, vector<1x14x1x128xf32>,
    } else {
    }
    %c0 = arith.constant 0 : index
    %c0_1 = arith.constant 0 : index
    %c0_2 = arith.constant 0 : index
    %3 = vector.load %arg4[%c0, %c0_1, %c0_2] : memref<1x1x256xi32, #tpu.memory_space<vmem>>, vector<1x1x256xi32>
    %4 = vector.shape_cast %3 : vector<1x1x256xi32> to vector<1x256xi32>
    %c-1_i32 = arith.constant -1 : i32
    %5 = vector.broadcast %c-1_i32 : i32 to vector<1x256xi32>
    %6 = arith.cmpi ne, %4, %5 : vector<1x256xi32>
    %7 = arith.extui %6 : vector<1x256xi1> to vector<1x256xi32>
    %8 = arith.sitofp %7 : vector<1x256xi32> to vector<1x256xf32>
    %c0_3 = arith.constant 0 : index
    %c0_4 = arith.constant 0 : index
    %c0_5 = arith.constant 0 : index
    %c0_6 = arith.constant 0 : index
    %9 = vector.load %arg3[%c0_3, %c0_4, %c0_5, %c0_6] : memref<1x4x1x256xf32, #tpu.memory_space<vmem>>, vector<1x1x1x256xf32>
    %10 = vector.shape_cast %9 : vector<1x1x1x256xf32> to vector<1x256xf32>
    %c0_7 = arith.constant 0 : index
    %c1 = arith.constant 1 : index
    %c0_8 = arith.constant 0 : index
    %c0_9 = arith.constant 0 : index
    %11 = vector.load %arg3[%c0_7, %c1, %c0_8, %c0_9] : memref<1x4x1x256xf32, #tpu.memory_space<vmem>>, vector<1x1x1x256xf32>
    %12 = vector.shape_cast %11 : vector<1x1x1x256xf32> to vector<1x256xf32>
    %13 = arith.maximumf %10, %12 : vector<1x256xf32>
    %c0_10 = arith.constant 0 : index
    %c2 = arith.constant 2 : index
    %c0_11 = arith.constant 0 : index
    %c0_12 = arith.constant 0 : index
    %14 = vector.load %arg3[%c0_10, %c2, %c0_11, %c0_12] : memref<1x4x1x256xf32, #tpu.memory_space<vmem>>, vector<1x1x1x256xf32>
    %15 = vector.shape_cast %14 : vector<1x1x1x256xf32> to vector<1x256xf32>
    %16 = arith.maximumf %13, %15 : vector<1x256xf32>
    %c0_13 = arith.constant 0 : index
    %c3 = arith.constant 3 : index
    %c0_14 = arith.constant 0 : index
    %c0_15 = arith.constant 0 : index
    %17 = vector.load %arg3[%c0_13, %c3, %c0_14, %c0_15] : memref<1x4x1x256xf32, #tpu.memory_space<vmem>>, vector<1x1x1x256xf32>
    %18 = vector.shape_cast %17 : vector<1x1x1x256xf32> to vector<1x256xf32>
    %19 = arith.maximumf %16, %18 : vector<1x256xf32>
    %c0_16 = arith.constant 0 : index
    %c0_17 = arith.constant 0 : index
    %c0_18 = arith.constant 0 : index
    %c0_19 = arith.constant 0 : index
    %20 = vector.load %arg3[%c0_16, %c0_17, %c0_18, %c0_19] : memref<1x4x1x256xf32, #tpu.memory_space<vmem>>, vector<1x1x1x256xf32>
    %21 = vector.shape_cast %20 : vector<1x1x1x256xf32> to vector<1x256xf32>
    %22 = arith.subf %21, %19 : vector<1x256xf32>
    %23 = math.exp %22 : vector<1x256xf32>
    %c0_20 = arith.constant 0 : index
    %c1_21 = arith.constant 1 : index
    %c0_22 = arith.constant 0 : index
    %c0_23 = arith.constant 0 : index
    %24 = vector.load %arg3[%c0_20, %c1_21, %c0_22, %c0_23] : memref<1x4x1x256xf32, #tpu.memory_space<vmem>>, vector<1x1x1x256xf32>
    %25 = vector.shape_cast %24 : vector<1x1x1x256xf32> to vector<1x256xf32>
    %26 = arith.subf %25, %19 : vector<1x256xf32>
    %27 = math.exp %26 : vector<1x256xf32>
    %28 = arith.addf %23, %27 : vector<1x256xf32>
    %c0_24 = arith.constant 0 : index
    %c2_25 = arith.constant 2 : index
    %c0_26 = arith.constant 0 : index
    %c0_27 = arith.constant 0 : index
    %29 = vector.load %arg3[%c0_24, %c2_25, %c0_26, %c0_27] : memref<1x4x1x256xf32, #tpu.memory_space<vmem>>, vector<1x1x1x256xf32>
    %30 = vector.shape_cast %29 : vector<1x1x1x256xf32> to vector<1x256xf32>
    %31 = arith.subf %30, %19 : vector<1x256xf32>
    %32 = math.exp %31 : vector<1x256xf32>
    %33 = arith.addf %28, %32 : vector<1x256xf32>
    %c0_28 = arith.constant 0 : index
    %c3_29 = arith.constant 3 : index
    %c0_30 = arith.constant 0 : index
    %c0_31 = arith.constant 0 : index
    %34 = vector.load %arg3[%c0_28, %c3_29, %c0_30, %c0_31] : memref<1x4x1x256xf32, #tpu.memory_space<vmem>>, vector<1x1x1x256xf32>
    %35 = vector.shape_cast %34 : vector<1x1x1x256xf32> to vector<1x256xf32>
    %36 = arith.subf %35, %19 : vector<1x256xf32>
    %37 = math.exp %36 : vector<1x256xf32>
    %38 = arith.addf %33, %37 : vector<1x256xf32>
    %39 = math.log %38 : vector<1x256xf32>
    %40 = tpu.reciprocal %38 {approx = true} : vector<1x256xf32> -> vector<1x256xf32>
    %cst = arith.constant 0.000000e+00 : f32
    %41 = vector.broadcast %cst : f32 to vector<1x256xf32>
    %cst_32 = arith.constant 0.000000e+00 : f32
    %42 = vector.broadcast %cst_32 : f32 to vector<1x256xf32>
    %c0_i32_33 = arith.constant 0 : i32
    %43 = vector.broadcast %c0_i32_33 : i32 to vector<1x256xi32>
    %44 = arith.cmpi eq, %4, %43 : vector<1x256xi32>
    %45 = arith.extui %44 : vector<1x256xi1> to vector<1x256xi32>
    %46 = arith.sitofp %45 : vector<1x256xi32> to vector<1x256xf32>
    %47 = arith.mulf %23, %40 : vector<1x256xf32>
    %48 = arith.mulf %47, %46 : vector<1x256xf32>
    %49 = arith.addf %41, %48 : vector<1x256xf32>
    %c0_34 = arith.constant 0 : index
    %c0_35 = arith.constant 0 : index
    %c0_36 = arith.constant 0 : index
    %c0_37 = arith.constant 0 : index
    %50 = vector.load %arg3[%c0_34, %c0_35, %c0_36, %c0_37] : memref<1x4x1x256xf32, #tpu.memory_space<vmem>>, vector<1x1x1x256xf32>
    %51 = vector.shape_cast %50 : vector<1x1x1x256xf32> to vector<1x256xf32>
    %52 = arith.mulf %51, %46 : vector<1x256xf32>
    %53 = arith.addf %42, %52 : vector<1x256xf32>
    %c0_38 = arith.constant 0 : index
    %c0_39 = arith.constant 0 : index
    %c0_40 = arith.constant 0 : index
    %c0_41 = arith.constant 0 : index
    %54 = vector.load %arg5[%c0_38, %c0_39, %c0_40, %c0_41] : memref<1x14x1x128xf32, #tpu.memory_space<vmem>>, vector<1x1x1x128xf32>
    %55 = vector.shape_cast %54 : vector<1x1x1x128xf32> to vector<1x128xf32>
    %56 = vector.extract_strided_slice %48 {offsets = [0, 0], sizes = [1, 128], strides = [1, 1]} : vector<1x256xf32> to vector<1x128xf32>
    %57 = vector.extract_strided_slice %48 {offsets = [0, 128], sizes = [1, 128], strides = [1, 1]} : vector<1x256xf32> to vector<1x128xf32>
    %58 = arith.addf %56, %57 : vector<1x128xf32>
    %59 = arith.addf %55, %58 : vector<1x128xf32>
    %c0_42 = arith.constant 0 : index
    %c0_43 = arith.constant 0 : index
    %c0_44 = arith.constant 0 : index
    %c0_45 = arith.constant 0 : index
    %60 = vector.load %arg5[%c0_42, %c0_43, %c0_44, %c0_45] : memref<1x14x1x128xf32, #tpu.memory_space<vmem>>, vector<1x1x1x128xf32>
    %61 = vector.shape_cast %60 : vector<1x1x1x128xf32> to vector<1x128xf32>
    %62 = vector.shape_cast %59 : vector<1x128xf32> to vector<1x1x1x128xf32>
    tpu.vector_store %arg5[%c0_42, %c0_43, %c0_44, %c0_45], %62 {strides = array<i32>} : memref<1x14x1x128xf32, #tpu.memory_space<vmem>>, vector<1x1x1x128xf32>,
    %c0_46 = arith.constant 0 : index
    %c4 = arith.constant 4 : index
    %c0_47 = arith.constant 0 : index
    %c0_48 = arith.constant 0 : index
    %63 = vector.load %arg5[%c0_46, %c4, %c0_47, %c0_48] : memref<1x14x1x128xf32, #tpu.memory_space<vmem>>, vector<1x1x1x128xf32>
    %64 = vector.shape_cast %63 : vector<1x1x1x128xf32> to vector<1x128xf32>
    %65 = arith.mulf %47, %8 : vector<1x256xf32>
    %66 = vector.extract_strided_slice %65 {offsets = [0, 0], sizes = [1, 128], strides = [1, 1]} : vector<1x256xf32> to vector<1x128xf32>
    %67 = vector.extract_strided_slice %65 {offsets = [0, 128], sizes = [1, 128], strides = [1, 1]} : vector<1x256xf32> to vector<1x128xf32>
    %68 = arith.addf %66, %67 : vector<1x128xf32>
    %69 = arith.addf %64, %68 : vector<1x128xf32>
    %c0_49 = arith.constant 0 : index
    %c4_50 = arith.constant 4 : index
    %c0_51 = arith.constant 0 : index
    %c0_52 = arith.constant 0 : index
    %70 = vector.load %arg5[%c0_49, %c4_50, %c0_51, %c0_52] : memref<1x14x1x128xf32, #tpu.memory_space<vmem>>, vector<1x1x1x128xf32>
    %71 = vector.shape_cast %70 : vector<1x1x1x128xf32> to vector<1x128xf32>
    %72 = vector.shape_cast %69 : vector<1x128xf32> to vector<1x1x1x128xf32>
    tpu.vector_store %arg5[%c0_49, %c4_50, %c0_51, %c0_52], %72 {strides = array<i32>} : memref<1x14x1x128xf32, #tpu.memory_space<vmem>>, vector<1x1x1x128xf32>,
    %c0_53 = arith.constant 0 : index
    %c8 = arith.constant 8 : index
    %c0_54 = arith.constant 0 : index
    %c0_55 = arith.constant 0 : index
    %73 = vector.load %arg5[%c0_53, %c8, %c0_54, %c0_55] : memref<1x14x1x128xf32, #tpu.memory_space<vmem>>, vector<1x1x1x128xf32>
    %74 = vector.shape_cast %73 : vector<1x1x1x128xf32> to vector<1x128xf32>
    %75 = vector.extract_strided_slice %46 {offsets = [0, 0], sizes = [1, 128], strides = [1, 1]} : vector<1x256xf32> to vector<1x128xf32>
    %76 = vector.extract_strided_slice %46 {offsets = [0, 128], sizes = [1, 128], strides = [1, 1]} : vector<1x256xf32> to vector<1x128xf32>
    %77 = arith.addf %75, %76 : vector<1x128xf32>
    %78 = arith.addf %74, %77 : vector<1x128xf32>
    %c0_56 = arith.constant 0 : index
    %c8_57 = arith.constant 8 : index
    %c0_58 = arith.constant 0 : index
    %c0_59 = arith.constant 0 : index
    %79 = vector.load %arg5[%c0_56, %c8_57, %c0_58, %c0_59] : memref<1x14x1x128xf32, #tpu.memory_space<vmem>>, vector<1x1x1x128xf32>
    %80 = vector.shape_cast %79 : vector<1x1x1x128xf32> to vector<1x128xf32>
    %81 = vector.shape_cast %78 : vector<1x128xf32> to vector<1x1x1x128xf32>
    tpu.vector_store %arg5[%c0_56, %c8_57, %c0_58, %c0_59], %81 {strides = array<i32>} : memref<1x14x1x128xf32, #tpu.memory_space<vmem>>, vector<1x1x1x128xf32>,
    %c1_i32 = arith.constant 1 : i32
    %82 = vector.broadcast %c1_i32 : i32 to vector<1x256xi32>
    %83 = arith.cmpi eq, %4, %82 : vector<1x256xi32>
    %84 = arith.extui %83 : vector<1x256xi1> to vector<1x256xi32>
    %85 = arith.sitofp %84 : vector<1x256xi32> to vector<1x256xf32>
    %86 = arith.mulf %27, %40 : vector<1x256xf32>
    %87 = arith.mulf %86, %85 : vector<1x256xf32>
    %88 = arith.addf %49, %87 : vector<1x256xf32>
    %c0_60 = arith.constant 0 : index
    %c1_61 = arith.constant 1 : index
    %c0_62 = arith.constant 0 : index
    %c0_63 = arith.constant 0 : index
    %89 = vector.load %arg3[%c0_60, %c1_61, %c0_62, %c0_63] : memref<1x4x1x256xf32, #tpu.memory_space<vmem>>, vector<1x1x1x256xf32>
    %90 = vector.shape_cast %89 : vector<1x1x1x256xf32> to vector<1x256xf32>
    %91 = arith.mulf %90, %85 : vector<1x256xf32>
    %92 = arith.addf %53, %91 : vector<1x256xf32>
    %c0_64 = arith.constant 0 : index
    %c1_65 = arith.constant 1 : index
    %c0_66 = arith.constant 0 : index
    %c0_67 = arith.constant 0 : index
    %93 = vector.load %arg5[%c0_64, %c1_65, %c0_66, %c0_67] : memref<1x14x1x128xf32, #tpu.memory_space<vmem>>, vector<1x1x1x128xf32>
    %94 = vector.shape_cast %93 : vector<1x1x1x128xf32> to vector<1x128xf32>
    %95 = vector.extract_strided_slice %87 {offsets = [0, 0], sizes = [1, 128], strides = [1, 1]} : vector<1x256xf32> to vector<1x128xf32>
    %96 = vector.extract_strided_slice %87 {offsets = [0, 128], sizes = [1, 128], strides = [1, 1]} : vector<1x256xf32> to vector<1x128xf32>
    %97 = arith.addf %95, %96 : vector<1x128xf32>
    %98 = arith.addf %94, %97 : vector<1x128xf32>
    %c0_68 = arith.constant 0 : index
    %c1_69 = arith.constant 1 : index
    %c0_70 = arith.constant 0 : index
    %c0_71 = arith.constant 0 : index
    %99 = vector.load %arg5[%c0_68, %c1_69, %c0_70, %c0_71] : memref<1x14x1x128xf32, #tpu.memory_space<vmem>>, vector<1x1x1x128xf32>
    %100 = vector.shape_cast %99 : vector<1x1x1x128xf32> to vector<1x128xf32>
    %101 = vector.shape_cast %98 : vector<1x128xf32> to vector<1x1x1x128xf32>
    tpu.vector_store %arg5[%c0_68, %c1_69, %c0_70, %c0_71], %101 {strides = array<i32>} : memref<1x14x1x128xf32, #tpu.memory_space<vmem>>, vector<1x1x1x128xf32>,
    %c0_72 = arith.constant 0 : index
    %c5 = arith.constant 5 : index
    %c0_73 = arith.constant 0 : index
    %c0_74 = arith.constant 0 : index
    %102 = vector.load %arg5[%c0_72, %c5, %c0_73, %c0_74] : memref<1x14x1x128xf32, #tpu.memory_space<vmem>>, vector<1x1x1x128xf32>
    %103 = vector.shape_cast %102 : vector<1x1x1x128xf32> to vector<1x128xf32>
    %104 = arith.mulf %86, %8 : vector<1x256xf32>
    %105 = vector.extract_strided_slice %104 {offsets = [0, 0], sizes = [1, 128], strides = [1, 1]} : vector<1x256xf32> to vector<1x128xf32>
    %106 = vector.extract_strided_slice %104 {offsets = [0, 128], sizes = [1, 128], strides = [1, 1]} : vector<1x256xf32> to vector<1x128xf32>
    %107 = arith.addf %105, %106 : vector<1x128xf32>
    %108 = arith.addf %103, %107 : vector<1x128xf32>
    %c0_75 = arith.constant 0 : index
    %c5_76 = arith.constant 5 : index
    %c0_77 = arith.constant 0 : index
    %c0_78 = arith.constant 0 : index
    %109 = vector.load %arg5[%c0_75, %c5_76, %c0_77, %c0_78] : memref<1x14x1x128xf32, #tpu.memory_space<vmem>>, vector<1x1x1x128xf32>
    %110 = vector.shape_cast %109 : vector<1x1x1x128xf32> to vector<1x128xf32>
    %111 = vector.shape_cast %108 : vector<1x128xf32> to vector<1x1x1x128xf32>
    tpu.vector_store %arg5[%c0_75, %c5_76, %c0_77, %c0_78], %111 {strides = array<i32>} : memref<1x14x1x128xf32, #tpu.memory_space<vmem>>, vector<1x1x1x128xf32>,
    %c0_79 = arith.constant 0 : index
    %c9 = arith.constant 9 : index
    %c0_80 = arith.constant 0 : index
    %c0_81 = arith.constant 0 : index
    %112 = vector.load %arg5[%c0_79, %c9, %c0_80, %c0_81] : memref<1x14x1x128xf32, #tpu.memory_space<vmem>>, vector<1x1x1x128xf32>
    %113 = vector.shape_cast %112 : vector<1x1x1x128xf32> to vector<1x128xf32>
    %114 = vector.extract_strided_slice %85 {offsets = [0, 0], sizes = [1, 128], strides = [1, 1]} : vector<1x256xf32> to vector<1x128xf32>
    %115 = vector.extract_strided_slice %85 {offsets = [0, 128], sizes = [1, 128], strides = [1, 1]} : vector<1x256xf32> to vector<1x128xf32>
    %116 = arith.addf %114, %115 : vector<1x128xf32>
    %117 = arith.addf %113, %116 : vector<1x128xf32>
    %c0_82 = arith.constant 0 : index
    %c9_83 = arith.constant 9 : index
    %c0_84 = arith.constant 0 : index
    %c0_85 = arith.constant 0 : index
    %118 = vector.load %arg5[%c0_82, %c9_83, %c0_84, %c0_85] : memref<1x14x1x128xf32, #tpu.memory_space<vmem>>, vector<1x1x1x128xf32>
    %119 = vector.shape_cast %118 : vector<1x1x1x128xf32> to vector<1x128xf32>
    %120 = vector.shape_cast %117 : vector<1x128xf32> to vector<1x1x1x128xf32>
    tpu.vector_store %arg5[%c0_82, %c9_83, %c0_84, %c0_85], %120 {strides = array<i32>} : memref<1x14x1x128xf32, #tpu.memory_space<vmem>>, vector<1x1x1x128xf32>,
    %c2_i32 = arith.constant 2 : i32
    %121 = vector.broadcast %c2_i32 : i32 to vector<1x256xi32>
    %122 = arith.cmpi eq, %4, %121 : vector<1x256xi32>
    %123 = arith.extui %122 : vector<1x256xi1> to vector<1x256xi32>
    %124 = arith.sitofp %123 : vector<1x256xi32> to vector<1x256xf32>
    %125 = arith.mulf %32, %40 : vector<1x256xf32>
    %126 = arith.mulf %125, %124 : vector<1x256xf32>
    %127 = arith.addf %88, %126 : vector<1x256xf32>
    %c0_86 = arith.constant 0 : index
    %c2_87 = arith.constant 2 : index
    %c0_88 = arith.constant 0 : index
    %c0_89 = arith.constant 0 : index
    %128 = vector.load %arg3[%c0_86, %c2_87, %c0_88, %c0_89] : memref<1x4x1x256xf32, #tpu.memory_space<vmem>>, vector<1x1x1x256xf32>
    %129 = vector.shape_cast %128 : vector<1x1x1x256xf32> to vector<1x256xf32>
    %130 = arith.mulf %129, %124 : vector<1x256xf32>
    %131 = arith.addf %92, %130 : vector<1x256xf32>
    %c0_90 = arith.constant 0 : index
    %c2_91 = arith.constant 2 : index
    %c0_92 = arith.constant 0 : index
    %c0_93 = arith.constant 0 : index
    %132 = vector.load %arg5[%c0_90, %c2_91, %c0_92, %c0_93] : memref<1x14x1x128xf32, #tpu.memory_space<vmem>>, vector<1x1x1x128xf32>
    %133 = vector.shape_cast %132 : vector<1x1x1x128xf32> to vector<1x128xf32>
    %134 = vector.extract_strided_slice %126 {offsets = [0, 0], sizes = [1, 128], strides = [1, 1]} : vector<1x256xf32> to vector<1x128xf32>
    %135 = vector.extract_strided_slice %126 {offsets = [0, 128], sizes = [1, 128], strides = [1, 1]} : vector<1x256xf32> to vector<1x128xf32>
    %136 = arith.addf %134, %135 : vector<1x128xf32>
    %137 = arith.addf %133, %136 : vector<1x128xf32>
    %c0_94 = arith.constant 0 : index
    %c2_95 = arith.constant 2 : index
    %c0_96 = arith.constant 0 : index
    %c0_97 = arith.constant 0 : index
    %138 = vector.load %arg5[%c0_94, %c2_95, %c0_96, %c0_97] : memref<1x14x1x128xf32, #tpu.memory_space<vmem>>, vector<1x1x1x128xf32>
    %139 = vector.shape_cast %138 : vector<1x1x1x128xf32> to vector<1x128xf32>
    %140 = vector.shape_cast %137 : vector<1x128xf32> to vector<1x1x1x128xf32>
    tpu.vector_store %arg5[%c0_94, %c2_95, %c0_96, %c0_97], %140 {strides = array<i32>} : memref<1x14x1x128xf32, #tpu.memory_space<vmem>>, vector<1x1x1x128xf32>,
    %c0_98 = arith.constant 0 : index
    %c6 = arith.constant 6 : index
    %c0_99 = arith.constant 0 : index
    %c0_100 = arith.constant 0 : index
    %141 = vector.load %arg5[%c0_98, %c6, %c0_99, %c0_100] : memref<1x14x1x128xf32, #tpu.memory_space<vmem>>, vector<1x1x1x128xf32>
    %142 = vector.shape_cast %141 : vector<1x1x1x128xf32> to vector<1x128xf32>
    %143 = arith.mulf %125, %8 : vector<1x256xf32>
    %144 = vector.extract_strided_slice %143 {offsets = [0, 0], sizes = [1, 128], strides = [1, 1]} : vector<1x256xf32> to vector<1x128xf32>
    %145 = vector.extract_strided_slice %143 {offsets = [0, 128], sizes = [1, 128], strides = [1, 1]} : vector<1x256xf32> to vector<1x128xf32>
    %146 = arith.addf %144, %145 : vector<1x128xf32>
    %147 = arith.addf %142, %146 : vector<1x128xf32>
    %c0_101 = arith.constant 0 : index
    %c6_102 = arith.constant 6 : index
    %c0_103 = arith.constant 0 : index
    %c0_104 = arith.constant 0 : index
    %148 = vector.load %arg5[%c0_101, %c6_102, %c0_103, %c0_104] : memref<1x14x1x128xf32, #tpu.memory_space<vmem>>, vector<1x1x1x128xf32>
    %149 = vector.shape_cast %148 : vector<1x1x1x128xf32> to vector<1x128xf32>
    %150 = vector.shape_cast %147 : vector<1x128xf32> to vector<1x1x1x128xf32>
    tpu.vector_store %arg5[%c0_101, %c6_102, %c0_103, %c0_104], %150 {strides = array<i32>} : memref<1x14x1x128xf32, #tpu.memory_space<vmem>>, vector<1x1x1x128xf32>,
    %c0_105 = arith.constant 0 : index
    %c10 = arith.constant 10 : index
    %c0_106 = arith.constant 0 : index
    %c0_107 = arith.constant 0 : index
    %151 = vector.load %arg5[%c0_105, %c10, %c0_106, %c0_107] : memref<1x14x1x128xf32, #tpu.memory_space<vmem>>, vector<1x1x1x128xf32>
    %152 = vector.shape_cast %151 : vector<1x1x1x128xf32> to vector<1x128xf32>
    %153 = vector.extract_strided_slice %124 {offsets = [0, 0], sizes = [1, 128], strides = [1, 1]} : vector<1x256xf32> to vector<1x128xf32>
    %154 = vector.extract_strided_slice %124 {offsets = [0, 128], sizes = [1, 128], strides = [1, 1]} : vector<1x256xf32> to vector<1x128xf32>
    %155 = arith.addf %153, %154 : vector<1x128xf32>
    %156 = arith.addf %152, %155 : vector<1x128xf32>
    %c0_108 = arith.constant 0 : index
    %c10_109 = arith.constant 10 : index
    %c0_110 = arith.constant 0 : index
    %c0_111 = arith.constant 0 : index
    %157 = vector.load %arg5[%c0_108, %c10_109, %c0_110, %c0_111] : memref<1x14x1x128xf32, #tpu.memory_space<vmem>>, vector<1x1x1x128xf32>
    %158 = vector.shape_cast %157 : vector<1x1x1x128xf32> to vector<1x128xf32>
    %159 = vector.shape_cast %156 : vector<1x128xf32> to vector<1x1x1x128xf32>
    tpu.vector_store %arg5[%c0_108, %c10_109, %c0_110, %c0_111], %159 {strides = array<i32>} : memref<1x14x1x128xf32, #tpu.memory_space<vmem>>, vector<1x1x1x128xf32>,
    %c3_i32 = arith.constant 3 : i32
    %160 = vector.broadcast %c3_i32 : i32 to vector<1x256xi32>
    %161 = arith.cmpi eq, %4, %160 : vector<1x256xi32>
    %162 = arith.extui %161 : vector<1x256xi1> to vector<1x256xi32>
    %163 = arith.sitofp %162 : vector<1x256xi32> to vector<1x256xf32>
    %164 = arith.mulf %37, %40 : vector<1x256xf32>
    %165 = arith.mulf %164, %163 : vector<1x256xf32>
    %166 = arith.addf %127, %165 : vector<1x256xf32>
    %c0_112 = arith.constant 0 : index
    %c3_113 = arith.constant 3 : index
    %c0_114 = arith.constant 0 : index
    %c0_115 = arith.constant 0 : index
    %167 = vector.load %arg3[%c0_112, %c3_113, %c0_114, %c0_115] : memref<1x4x1x256xf32, #tpu.memory_space<vmem>>, vector<1x1x1x256xf32>
    %168 = vector.shape_cast %167 : vector<1x1x1x256xf32> to vector<1x256xf32>
    %169 = arith.mulf %168, %163 : vector<1x256xf32>
    %170 = arith.addf %131, %169 : vector<1x256xf32>
    %c0_116 = arith.constant 0 : index
    %c3_117 = arith.constant 3 : index
    %c0_118 = arith.constant 0 : index
    %c0_119 = arith.constant 0 : index
    %171 = vector.load %arg5[%c0_116, %c3_117, %c0_118, %c0_119] : memref<1x14x1x128xf32, #tpu.memory_space<vmem>>, vector<1x1x1x128xf32>
    %172 = vector.shape_cast %171 : vector<1x1x1x128xf32> to vector<1x128xf32>
    %173 = vector.extract_strided_slice %165 {offsets = [0, 0], sizes = [1, 128], strides = [1, 1]} : vector<1x256xf32> to vector<1x128xf32>
    %174 = vector.extract_strided_slice %165 {offsets = [0, 128], sizes = [1, 128], strides = [1, 1]} : vector<1x256xf32> to vector<1x128xf32>
    %175 = arith.addf %173, %174 : vector<1x128xf32>
    %176 = arith.addf %172, %175 : vector<1x128xf32>
    %c0_120 = arith.constant 0 : index
    %c3_121 = arith.constant 3 : index
    %c0_122 = arith.constant 0 : index
    %c0_123 = arith.constant 0 : index
    %177 = vector.load %arg5[%c0_120, %c3_121, %c0_122, %c0_123] : memref<1x14x1x128xf32, #tpu.memory_space<vmem>>, vector<1x1x1x128xf32>
    %178 = vector.shape_cast %177 : vector<1x1x1x128xf32> to vector<1x128xf32>
    %179 = vector.shape_cast %176 : vector<1x128xf32> to vector<1x1x1x128xf32>
    tpu.vector_store %arg5[%c0_120, %c3_121, %c0_122, %c0_123], %179 {strides = array<i32>} : memref<1x14x1x128xf32, #tpu.memory_space<vmem>>, vector<1x1x1x128xf32>,
    %c0_124 = arith.constant 0 : index
    %c7 = arith.constant 7 : index
    %c0_125 = arith.constant 0 : index
    %c0_126 = arith.constant 0 : index
    %180 = vector.load %arg5[%c0_124, %c7, %c0_125, %c0_126] : memref<1x14x1x128xf32, #tpu.memory_space<vmem>>, vector<1x1x1x128xf32>
    %181 = vector.shape_cast %180 : vector<1x1x1x128xf32> to vector<1x128xf32>
    %182 = arith.mulf %164, %8 : vector<1x256xf32>
    %183 = vector.extract_strided_slice %182 {offsets = [0, 0], sizes = [1, 128], strides = [1, 1]} : vector<1x256xf32> to vector<1x128xf32>
    %184 = vector.extract_strided_slice %182 {offsets = [0, 128], sizes = [1, 128], strides = [1, 1]} : vector<1x256xf32> to vector<1x128xf32>
    %185 = arith.addf %183, %184 : vector<1x128xf32>
    %186 = arith.addf %181, %185 : vector<1x128xf32>
    %c0_127 = arith.constant 0 : index
    %c7_128 = arith.constant 7 : index
    %c0_129 = arith.constant 0 : index
    %c0_130 = arith.constant 0 : index
    %187 = vector.load %arg5[%c0_127, %c7_128, %c0_129, %c0_130] : memref<1x14x1x128xf32, #tpu.memory_space<vmem>>, vector<1x1x1x128xf32>
    %188 = vector.shape_cast %187 : vector<1x1x1x128xf32> to vector<1x128xf32>
    %189 = vector.shape_cast %186 : vector<1x128xf32> to vector<1x1x1x128xf32>
    tpu.vector_store %arg5[%c0_127, %c7_128, %c0_129, %c0_130], %189 {strides = array<i32>} : memref<1x14x1x128xf32, #tpu.memory_space<vmem>>, vector<1x1x1x128xf32>,
    %c0_131 = arith.constant 0 : index
    %c11 = arith.constant 11 : index
    %c0_132 = arith.constant 0 : index
    %c0_133 = arith.constant 0 : index
    %190 = vector.load %arg5[%c0_131, %c11, %c0_132, %c0_133] : memref<1x14x1x128xf32, #tpu.memory_space<vmem>>, vector<1x1x1x128xf32>
    %191 = vector.shape_cast %190 : vector<1x1x1x128xf32> to vector<1x128xf32>
    %192 = vector.extract_strided_slice %163 {offsets = [0, 0], sizes = [1, 128], strides = [1, 1]} : vector<1x256xf32> to vector<1x128xf32>
    %193 = vector.extract_strided_slice %163 {offsets = [0, 128], sizes = [1, 128], strides = [1, 1]} : vector<1x256xf32> to vector<1x128xf32>
    %194 = arith.addf %192, %193 : vector<1x128xf32>
    %195 = arith.addf %191, %194 : vector<1x128xf32>
    %c0_134 = arith.constant 0 : index
    %c11_135 = arith.constant 11 : index
    %c0_136 = arith.constant 0 : index
    %c0_137 = arith.constant 0 : index
    %196 = vector.load %arg5[%c0_134, %c11_135, %c0_136, %c0_137] : memref<1x14x1x128xf32, #tpu.memory_space<vmem>>, vector<1x1x1x128xf32>
    %197 = vector.shape_cast %196 : vector<1x1x1x128xf32> to vector<1x128xf32>
    %198 = vector.shape_cast %195 : vector<1x128xf32> to vector<1x1x1x128xf32>
    tpu.vector_store %arg5[%c0_134, %c11_135, %c0_136, %c0_137], %198 {strides = array<i32>} : memref<1x14x1x128xf32, #tpu.memory_space<vmem>>, vector<1x1x1x128xf32>,
    %199 = arith.addf %19, %39 : vector<1x256xf32>
    %200 = arith.mulf %199, %8 : vector<1x256xf32>
    %201 = arith.subf %200, %170 : vector<1x256xf32>
    %cst_138 = arith.constant 1.000000e+00 : f32
    %202 = vector.broadcast %cst_138 : f32 to vector<1x256xf32>
    %203 = arith.subf %202, %166 : vector<1x256xf32>
    %204 = arith.mulf %203, %203 : vector<1x256xf32>
    %205 = arith.mulf %204, %201 : vector<1x256xf32>
    %c0_139 = arith.constant 0 : index
    %c12 = arith.constant 12 : index
    %c0_140 = arith.constant 0 : index
    %c0_141 = arith.constant 0 : index
    %206 = vector.load %arg5[%c0_139, %c12, %c0_140, %c0_141] : memref<1x14x1x128xf32, #tpu.memory_space<vmem>>, vector<1x1x1x128xf32>
    %207 = vector.shape_cast %206 : vector<1x1x1x128xf32> to vector<1x128xf32>
    %208 = vector.extract_strided_slice %201 {offsets = [0, 0], sizes = [1, 128], strides = [1, 1]} : vector<1x256xf32> to vector<1x128xf32>
    %209 = vector.extract_strided_slice %201 {offsets = [0, 128], sizes = [1, 128], strides = [1, 1]} : vector<1x256xf32> to vector<1x128xf32>
    %210 = arith.addf %208, %209 : vector<1x128xf32>
    %211 = arith.addf %207, %210 : vector<1x128xf32>
    %c0_142 = arith.constant 0 : index
    %c12_143 = arith.constant 12 : index
    %c0_144 = arith.constant 0 : index
    %c0_145 = arith.constant 0 : index
    %212 = vector.load %arg5[%c0_142, %c12_143, %c0_144, %c0_145] : memref<1x14x1x128xf32, #tpu.memory_space<vmem>>, vector<1x1x1x128xf32>
    %213 = vector.shape_cast %212 : vector<1x1x1x128xf32> to vector<1x128xf32>
    %214 = vector.shape_cast %211 : vector<1x128xf32> to vector<1x1x1x128xf32>
    tpu.vector_store %arg5[%c0_142, %c12_143, %c0_144, %c0_145], %214 {strides = array<i32>} : memref<1x14x1x128xf32, #tpu.memory_space<vmem>>, vector<1x1x1x128xf32>,
    %c0_146 = arith.constant 0 : index
    %c13 = arith.constant 13 : index
    %c0_147 = arith.constant 0 : index
    %c0_148 = arith.constant 0 : index
    %215 = vector.load %arg5[%c0_146, %c13, %c0_147, %c0_148] : memref<1x14x1x128xf32, #tpu.memory_space<vmem>>, vector<1x1x1x128xf32>
    %216 = vector.shape_cast %215 : vector<1x1x1x128xf32> to vector<1x128xf32>
    %217 = vector.extract_strided_slice %205 {offsets = [0, 0], sizes = [1, 128], strides = [1, 1]} : vector<1x256xf32> to vector<1x128xf32>
    %218 = vector.extract_strided_slice %205 {offsets = [0, 128], sizes = [1, 128], strides = [1, 1]} : vector<1x256xf32> to vector<1x128xf32>
    %219 = arith.addf %217, %218 : vector<1x128xf32>
    %220 = arith.addf %216, %219 : vector<1x128xf32>
    %c0_149 = arith.constant 0 : index
    %c13_150 = arith.constant 13 : index
    %c0_151 = arith.constant 0 : index
    %c0_152 = arith.constant 0 : index
    %221 = vector.load %arg5[%c0_149, %c13_150, %c0_151, %c0_152] : memref<1x14x1x128xf32, #tpu.memory_space<vmem>>, vector<1x1x1x128xf32>
    %222 = vector.shape_cast %221 : vector<1x1x1x128xf32> to vector<1x128xf32>
    %223 = vector.shape_cast %220 : vector<1x128xf32> to vector<1x1x1x128xf32>
    tpu.vector_store %arg5[%c0_149, %c13_150, %c0_151, %c0_152], %223 {strides = array<i32>} : memref<1x14x1x128xf32, #tpu.memory_space<vmem>>, vector<1x1x1x128xf32>,
    return
  }
  func.func @transform_0(%arg0: i32, %arg1: i32, %arg2: i32) -> (i32, i32, i32, i32) {
    %c1_i32 = arith.constant 1 : i32
    %0 = arith.muli %arg1, %c1_i32 : i32
    %1 = arith.addi %0, %arg2 : i32
    %c0_i32 = arith.constant 0 : i32
    %c0_i32_0 = arith.constant 0 : i32
    %c0_i32_1 = arith.constant 0 : i32
    return %arg0, %c0_i32, %1, %c0_i32_0 : i32, i32, i32, i32
  }
  func.func @transform_1(%arg0: i32, %arg1: i32, %arg2: i32) -> (i32, i32, i32) {
    %c1_i32 = arith.constant 1 : i32
    %0 = arith.muli %arg1, %c1_i32 : i32
    %1 = arith.addi %0, %arg2 : i32
    %c0_i32 = arith.constant 0 : i32
    %c0_i32_0 = arith.constant 0 : i32
    return %arg0, %1, %c0_i32 : i32, i32, i32
  }
  func.func @transform_2(%arg0: i32, %arg1: i32, %arg2: i32) -> (i32, i32, i32, i32) {
    %c1_i32 = arith.constant 1 : i32
    %0 = arith.muli %arg0, %c1_i32 : i32
    %1 = arith.addi %0, %arg1 : i32
    %c0_i32 = arith.constant 0 : i32
    %c0_i32_0 = arith.constant 0 : i32
    %c0_i32_1 = arith.constant 0 : i32
    %c0_i32_2 = arith.constant 0 : i32
    return %1, %c0_i32, %c0_i32_0, %c0_i32_1 : i32, i32, i32, i32
  }
}

</mosaic_0001>

<bundles_post_ra>
// kernel: hybrid_loss.1
= control target key start
LH: loop header
LB: loop body
LE: loop exit
PB: predicated region body
PF: predicated region fallthrough
CT: control target
= control target key end

     0   :  { %s644_s9 = smov 0   ;;  %s646_s10 = smov 0   ;;  %s795_s0 = inlined_call_operand.vmem [shape: f32[2,4,1,256], index: 0, kind: input, shape index: {}]   ;;  %s796_s1 = inlined_call_operand.vmem [shape: s32[2,1,256], index: 1, kind: input, shape index: {}]   ;;  %s797_s2 = inlined_call_operand.vmem [shape: f32[2,14,1,128], index: 2, kind: output, shape index: {}]  }
   0x1   :  { %s648_s11 = smov 0  }
   0x2 LB: > { %s31_s12 = sadd.s32 1, %s622_s10  ;;  %p524_p0 = scmp.ge.s32.totalorder %s626_s11, 1  ;;  %s626_s11 = sphi %s648_s11, %s12_s11   ;;  %s622_s10 = sphi %s646_s10, %s799_s10   ;;  %s618_s9 = sphi %s644_s9, %s798_s9  }
   0x3   : > { %p33_p1 = scmp.ge.s32.totalorder %s31_s12, 2  ;;  %p161_p2 = scmp.lt.s32.totalorder %s626_s11, 3 }
   0x5   : > { %s801_s12 = smov (%p33_p1, %s31_s12), 0  ;;  %p162_p3 = pnand %p524_p0, %p161_p2 }
   0x6   : > { %p197_p4 = scmp.lt.s32.totalorder (!%p162_p3), %s618_s9, 1 }
   0x7   : > { %165 = sbr.rel (%p162_p3) target bundleno = 90 (0x5a), region = 28 }
   0xc   : > { %s803_s9 = smov (!%p197_p4, %s618_s9), 1  ;;  %v628_v3 = vmov 0.0  }
   0xd   : > { %s566_s13 = smul.u32 14, %s803_s9  ;;  %s525_s14 = sshll.u32 %s803_s9, 3 }
   0xe   : > { %s665_s17 = scalar_lea.vmem %s795_s0, %s525_s14  ;;  %s526_s18 = sshll.u32 %s803_s9, 1 }
   0xf   : > { %s670_s21 = scalar_lea.vmem %s797_s2, %s566_s13  ;;  %s214_s24 = scalar_lea.vmem %s796_s1, %s526_s18  ;;  %v676_v0 = vld [vmem:[%s665_s17] sm:$0x3]  ;;  %v528_v1 = vld [vmem:[%s665_s17 + $0x2] sm:$0x3]  ;;  %v529_v2 = vld [vmem:[%s665_s17 + $0x4] sm:$0x3] }
  0x10   : > { %226 = vst [vmem:[%s670_s21] sm:$0x1] %v628_v3  ;;  %227 = vst [vmem:[%s670_s21 + $0x1] sm:$0x1] %v628_v3  ;;  %v708_v4 = vld [vmem:[%s214_s24] sm:$0x3]  ;;  %v247_v5 = vmax.f32 %v676_v0, %v528_v1 }
  0x11   : > { %228 = vst [vmem:[%s670_s21 + $0x2] sm:$0x1] %v628_v3  ;;  %229 = vst [vmem:[%s670_s21 + $0x3] sm:$0x1] %v628_v3  ;;  %v530_v6 = vld [vmem:[%s665_s17 + $0x6] sm:$0x3] }
  0x12   : > { %230 = vst [vmem:[%s670_s21 + $0x4] sm:$0x1] %v628_v3  ;;  %231 = vst [vmem:[%s670_s21 + $0x5] sm:$0x1] %v628_v3  ;;  %vm272_vm0 = vcmp.eq.s32.totalorder %v708_v4, 0  ;;  %vm304_vm1 = vcmp.eq.s32.totalorder %v708_v4, 1  ;;  %v250_v7 = vmax.f32 %v247_v5, %v529_v2 }
  0x13   : > { %232 = vst [vmem:[%s670_s21 + $0x6] sm:$0x1] %v628_v3  ;;  %233 = vst [vmem:[%s670_s21 + $0x7] sm:$0x1] %v628_v3  ;;  %vm338_vm2 = vcmp.eq.s32.totalorder %v708_v4, 2  ;;  %v716_v8 = vsel %vm272_vm0, 1.0, %v628_v3 }
  0x14   : > { %234 = vst [vmem:[%s670_s21 + $0x8] sm:$0x1] %v628_v3  ;;  %235 = vst [vmem:[%s670_s21 + $0x9] sm:$0x1] %v628_v3  ;;  %v719_v9 = vsel %vm304_vm1, 1.0, %v628_v3  ;;  %v299_v10 = vrot.slane %v716_v8, 1  ;;  %v727_v13 = vmax.f32 %v250_v7, %v530_v6  ;;  %v278_v45 = vmul.f32 %v716_v8, %v676_v0 }
  0x15   : > { %236 = vst [vmem:[%s670_s21 + $0xa] sm:$0x1] %v628_v3  ;;  %237 = vst [vmem:[%s670_s21 + $0xb] sm:$0x1] %v628_v3  ;;  %v333_v11 = vrot.slane %v719_v9, 1  ;;  %v724_v12 = vsel %vm338_vm2, 1.0, %v628_v3 }
  0x16   : > { %238 = vst [vmem:[%s670_s21 + $0xc] sm:$0x1] %v628_v3  ;;  %239 = vst [vmem:[%s670_s21 + $0xd] sm:$0x1] %v628_v3  ;;  %vm372_vm3 = vcmp.eq.s32.totalorder %v708_v4, 3  ;;  %v367_v14 = vrot.slane %v724_v12, 1  ;;  %v301_v16 = vadd.f32 %v716_v8, %v299_v10  ;;  %v254_v18 = vsub.f32 %v676_v0, %v727_v13 }
  0x17   : > { %v731_v15 = vsel %vm372_vm3, 1.0, %v628_v3  ;;  %v257_v19 = vsub.f32 %v528_v1, %v727_v13  ;;  %v261_v20 = vsub.f32 %v529_v2, %v727_v13  ;;  %v265_v21 = vsub.f32 %v530_v6, %v727_v13  ;;  %v537_v44 = vld [vmem:[%s665_s17 + $0x2] sm:$0x3]  ;;  %v545_v47 = vld [vmem:[%s665_s17 + $0x4] sm:$0x3] }
  0x18   : > { %v401_v17 = vrot.slane %v731_v15, 1  ;;  %v335_v23 = vadd.f32 %v719_v9, %v333_v11  ;;  %v369_v24 = vadd.f32 %v724_v12, %v367_v14  ;;  %v255_v25 = vmul.f32 1.442695, %v254_v18  ;;  %v553_v50 = vld [vmem:[%s665_s17 + $0x6] sm:$0x3] }
  0x19   : > { %v258_v26 = vmul.f32 1.442695, %v257_v19  ;;  %v262_v27 = vmul.f32 1.442695, %v261_v20  ;;  %v266_v29 = vmul.f32 1.442695, %v265_v21  ;;  %v311_v46 = vmul.f32 %v537_v44, %v719_v9 }
  0x1a   : > { %v403_v30 = vadd.f32 %v731_v15, %v401_v17  ;;  %592 = vpow2.f32 %v255_v25  ;;  %v345_v49 = vmul.f32 %v545_v47, %v724_v12  ;;  %vm241_vm4 = vcmp.ne.s32.totalorder %v708_v4, 4294967295  ;;  %v280_v1 = vld [vmem:[%s670_s21] sm:$0x1]  ;;  %v532_v2 = vld [vmem:[%s670_s21 + $0x4] sm:$0x1] }
  0x1b   : > { %v534_v22 = vld [vmem:[%s670_s21 + $0x8] sm:$0x1]  ;;  %v542_v31 = vld [vmem:[%s670_s21 + $0x9] sm:$0x1]  ;;  %594 = vpow2.f32 %v258_v26  ;;  %v312_v48 = vadd.f32 %v311_v46, %v278_v45  ;;  %v527_v57 = vsel %vm241_vm4, 1.0, %v628_v3  ;;  %v379_v60 = vmul.f32 %v553_v50, %v731_v15 }
  0x1c   : > { %v302_v28 = vadd.f32 %v534_v22, %v301_v16  ;;  %v336_v32 = vadd.f32 %v542_v31, %v335_v23  ;;  %v550_v33 = vld [vmem:[%s670_s21 + $0xa] sm:$0x1]  ;;  %596 = vpow2.f32 %v262_v27  ;;  %v558_v35 = vld [vmem:[%s670_s21 + $0xb] sm:$0x1]  ;;  %v538_v4 = vld [vmem:[%s670_s21 + $0x1] sm:$0x1] }
  0x1d   : > { %v370_v34 = vadd.f32 %v550_v33, %v369_v24  ;;  %598 = vpow2.f32 %v266_v29  ;;  %v404_v36 = vadd.f32 %v558_v35, %v403_v30  ;;  %v346_v59 = vadd.f32 %v345_v49, %v312_v48  ;;  %v540_v14 = vld [vmem:[%s670_s21 + $0x5] sm:$0x1]  ;;  %v546_v17 = vld [vmem:[%s670_s21 + $0x2] sm:$0x1]  ;;  %v554_v24 = vld [vmem:[%s670_s21 + $0x3] sm:$0x1] }
  0x1e   : > { %535 = vst [vmem:[%s670_s21 + $0x8] sm:$0x1] %v302_v28  ;;  %543 = vst [vmem:[%s670_s21 + $0x9] sm:$0x1] %v336_v32  ;;  %v556_v25 = vld [vmem:[%s670_s21 + $0x7] sm:$0x1] }
  0x1f   : > { %551 = vst [vmem:[%s670_s21 + $0xa] sm:$0x1] %v370_v34  ;;  %559 = vst [vmem:[%s670_s21 + $0xb] sm:$0x1] %v404_v36  ;;  %v560_v47 = vld [vmem:[%s670_s21 + $0xc] sm:$0x1] }
  0x27   : > { %v593_v37 = vpop.eup %592 }
  0x28   : > { %v595_v38 = vpop.eup %594 }
  0x29   : > { %v597_v39 = vpop.eup %596  ;;  %v260_v40 = vadd.f32 %v595_v38, %v593_v37 }
  0x2a   : > { %v599_v41 = vpop.eup %598 }
  0x2b   : > { %v264_v42 = vadd.f32 %v597_v39, %v260_v40 }
  0x2d   : > { %v268_v43 = vadd.f32 %v599_v41, %v264_v42 }
  0x2f   : > { %600 = vrcp.f32 %v268_v43 }
  0x30   : > { %602 = vlog2.f32 %v268_v43 }
  0x3c   : > { %v601_v51 = vpop.eup %600 }
  0x3d   : > { %v603_v52 = vpop.eup %602  ;;  %v275_v53 = vmul.f32 %v601_v51, %v593_v37  ;;  %v307_v54 = vmul.f32 %v601_v51, %v595_v38  ;;  %v341_v55 = vmul.f32 %v601_v51, %v597_v39  ;;  %v375_v56 = vmul.f32 %v601_v51, %v599_v41 }
  0x3e   : > { %v270_v58 = vmul.f32 0.6931472, %v603_v52  ;;  %v380_v38 = vadd.f32 %v379_v60, %v346_v59  ;;  %v562_v52 = vld [vmem:[%s670_s21 + $0xd] sm:$0x1] }
  0x3f   : > { %v276_v61 = vmul.f32 %v716_v8, %v275_v53  ;;  %v289_v62 = vmul.f32 %v527_v57, %v275_v53  ;;  %v308_v63 = vmul.f32 %v719_v9, %v307_v54  ;;  %v323_v0 = vmul.f32 %v527_v57, %v307_v54 }
  0x40   : > { %v342_v5 = vmul.f32 %v724_v12, %v341_v55  ;;  %v357_v6 = vmul.f32 %v527_v57, %v341_v55  ;;  %v376_v3 = vmul.f32 %v731_v15, %v375_v56  ;;  %v391_v7 = vmul.f32 %v527_v57, %v375_v56  ;;  %v548_v15 = vld [vmem:[%s670_s21 + $0x6] sm:$0x1] }
  0x41   : > { %v282_v10 = vrot.slane %v276_v61, 1  ;;  %v291_v11 = vrot.slane %v289_v62, 1  ;;  %v316_v8 = vrot.slane %v308_v63, 1  ;;  %v325_v16 = vrot.slane %v323_v0, 1 }
  0x42   : > { %v350_v9 = vrot.slane %v342_v5, 1  ;;  %v359_v18 = vrot.slane %v357_v6, 1  ;;  %v384_v19 = vrot.slane %v376_v3, 1  ;;  %v393_v20 = vrot.slane %v391_v7, 1 }
  0x43   : > { %v284_v21 = vadd.f32 %v282_v10, %v276_v61  ;;  %v293_v22 = vadd.f32 %v291_v11, %v289_v62  ;;  %v318_v12 = vadd.f32 %v316_v8, %v308_v63  ;;  %v327_v23 = vadd.f32 %v325_v16, %v323_v0 }
  0x44   : > { %v352_v26 = vadd.f32 %v350_v9, %v342_v5  ;;  %v361_v27 = vadd.f32 %v359_v18, %v357_v6  ;;  %v386_v28 = vadd.f32 %v384_v19, %v376_v3  ;;  %v395_v29 = vadd.f32 %v393_v20, %v391_v7 }
  0x45   : > { %v285_v30 = vadd.f32 %v284_v21, %v280_v1  ;;  %v294_v31 = vadd.f32 %v532_v2, %v293_v22  ;;  %v319_v32 = vadd.f32 %v538_v4, %v318_v12  ;;  %v328_v33 = vadd.f32 %v540_v14, %v327_v23 }
  0x46   : > { %v353_v34 = vadd.f32 %v546_v17, %v352_v26  ;;  %v362_v35 = vadd.f32 %v548_v15, %v361_v27  ;;  %v387_v36 = vadd.f32 %v554_v24, %v386_v28  ;;  %v396_v37 = vadd.f32 %v556_v25, %v395_v29 }
  0x47   : > { %286 = vst [vmem:[%s670_s21] sm:$0x1] %v285_v30  ;;  %533 = vst [vmem:[%s670_s21 + $0x4] sm:$0x1] %v294_v31  ;;  %v406_v39 = vadd.f32 %v270_v58, %v727_v13  ;;  %v309_v40 = vadd.f32 %v308_v63, %v276_v61 }
  0x48   : > { %539 = vst [vmem:[%s670_s21 + $0x1] sm:$0x1] %v319_v32  ;;  %541 = vst [vmem:[%s670_s21 + $0x5] sm:$0x1] %v328_v33 }
  0x49   : > { %547 = vst [vmem:[%s670_s21 + $0x2] sm:$0x1] %v353_v34  ;;  %549 = vst [vmem:[%s670_s21 + $0x6] sm:$0x1] %v362_v35  ;;  %v407_v41 = vmul.f32 %v527_v57, %v406_v39  ;;  %v343_v42 = vadd.f32 %v342_v5, %v309_v40 }
  0x4a   : > { %555 = vst [vmem:[%s670_s21 + $0x3] sm:$0x1] %v387_v36  ;;  %557 = vst [vmem:[%s670_s21 + $0x7] sm:$0x1] %v396_v37 }
  0x4b   : > { %v408_v43 = vsub.f32 %v407_v41, %v380_v38  ;;  %v377_v44 = vadd.f32 %v376_v3, %v343_v42 }
  0x4d   : > { %v415_v45 = vrot.slane %v408_v43, 1  ;;  %v409_v46 = vsub.f32 1.0, %v377_v44 }
  0x4f   : > { %v417_v48 = vadd.f32 %v415_v45, %v408_v43  ;;  %v410_v49 = vmul.f32 %v409_v46, %v409_v46 }
  0x51   : > { %v418_v50 = vadd.f32 %v560_v47, %v417_v48  ;;  %v411_v51 = vmul.f32 %v410_v49, %v408_v43 }
  0x53   : > { %561 = vst [vmem:[%s670_s21 + $0xc] sm:$0x1] %v418_v50  ;;  %v423_v13 = vrot.slane %v411_v51, 1 }
  0x55   : > { %v425_v53 = vadd.f32 %v423_v13, %v411_v51 }
  0x57   : > { %v426_v54 = vadd.f32 %v562_v52, %v425_v53 }
  0x59   : > { %563 = vst [vmem:[%s670_s21 + $0xd] sm:$0x1] %v426_v54 }
  0x5a PF: > { %s12_s11 = sadd.s32 1, %s626_s11   ;;  %s798_s9 = smov %s622_s10 }
  0x5b   : > { %p9_p5 = scmp.ge.s32.totalorder %s12_s11, 4   ;;  %s799_s10 = smov %s801_s12 }
  0x5d   :  { %11 = sbr.rel (!%p9_p5) target bundleno = 2 (0x2), region = 81 }

</bundles_post_ra>
